<compile_context>
chip_gen: v7x
topology: tpu7x:2x2x1
jax: 0.10.0
libtpu: 0.0.40
codegen_flags: <defaults>
</compile_context>

<pallas_src>
import jax
import jax.numpy as jnp
from jax.experimental import pallas as pl
from jax.experimental.pallas import tpu as pltpu


def _round_up(x, m):
    return ((x + m - 1) // m) * m


def _classifier_kernel(x_ref, w_ref, b_ref, o_ref):
    # x_ref: (tile_n, K)   w_ref: (K, C_pad)   b_ref: (1, C_pad)
    # o_ref: (tile_n, C_pad)
    z = jnp.dot(x_ref[...], w_ref[...], preferred_element_type=jnp.float32)
    z = z + b_ref[...]                       # broadcast bias over the batch tile
    # Row-wise log-softmax; padded class lanes carry bias = -1e30 so their
    # exp(shifted) is exactly 0 and they never affect the real classes.
    m = jnp.max(z, axis=-1, keepdims=True)
    shifted = z - m
    lse = jnp.log(jnp.sum(jnp.exp(shifted), axis=-1, keepdims=True))
    o_ref[...] = (shifted - lse).astype(o_ref.dtype)


def classifier_forward(
    x_nchw,
    weight,
    bias,
    *,
    compute_dtype=jnp.bfloat16,   # streamed dtype; accumulation is always f32
    tile_n_max=1024,              # VMEM-safe on v5e/v6e/v7x (bf16 or f32)
    min_pallas_n=64,              # below this, plain XLA beats kernel overhead
):
    """x_nchw: (N, 40, 1, 31); weight: (C, 40, 1, 31); bias: (C,) -> (N, C) f32."""
    N = x_nchw.shape[0]
    C = weight.shape[0]
    K = weight.shape[1] * weight.shape[2] * weight.shape[3]

    # Flatten NCHW exactly like PyTorch's weight layout (C_in, kH, kW row-major).
    # Reshape is a metadata-only op; the dtype cast ideally fuses into the
    # producing layer (it is a no-op if the caller already supplies bf16).
    x_flat = x_nchw.reshape(N, K).astype(compute_dtype)
    w_flat = weight.reshape(C, K).astype(compute_dtype)
    b_f32 = bias.astype(jnp.float32)

    if N < min_pallas_n:
        # Tiny-batch shortcut (production case N~2): the XLA-fused path wins.
        logits = jnp.dot(x_flat, w_flat.T, preferred_element_type=jnp.float32) + b_f32
        return jax.nn.log_softmax(logits, axis=-1)

    C_pad = _round_up(max(C, 1), 128)        # 4 -> 128: lane-dense logits/store

    # One-time host-side transpose to MXU-native (K, C_pad); ~20 KB, free.
    w_p = jnp.zeros((K, C_pad), compute_dtype).at[:, :C].set(w_flat.T)
    # Padded classes get a huge negative bias so they vanish in the softmax.
    b_p = jnp.full((1, C_pad), -1e30, jnp.float32).at[0, :C].set(b_f32)

    # Tile selection: aim for >=4 grid steps (dual-TC sharding on v7x) while
    # capping the tile at the VMEM-safe maximum; no batch padding — Pallas
    # handles the partial trailing block.
    if N <= 8:
        tile_n = N                            # block dim == full array dim
    else:
        steps = max(pl.cdiv(N, tile_n_max), min(4, pl.cdiv(N, 8)))
        tile_n = min(_round_up(pl.cdiv(N, steps), 8), _round_up(tile_n_max, 8))
    grid_n = pl.cdiv(N, tile_n)

    itemsize = jnp.dtype(compute_dtype).itemsize
    cost = pl.CostEstimate(
        flops=2 * N * K * C_pad,
        transcendentals=N * C_pad,
        bytes_accessed=N * K * itemsize + K * C_pad * itemsize + N * C_pad * 4 + C_pad * 4,
    )

    out = pl.pallas_call(
        _classifier_kernel,
        out_shape=jax.ShapeDtypeStruct((N, C_pad), jnp.float32),
        grid=(grid_n,),
        in_specs=[
            pl.BlockSpec((tile_n, K), lambda i: (i, 0)),   # x: streamed per tile
            pl.BlockSpec((K, C_pad), lambda i: (0, 0)),    # W^T: resident
            pl.BlockSpec((1, C_pad), lambda i: (0, 0)),    # bias: resident
        ],
        out_specs=pl.BlockSpec((tile_n, C_pad), lambda i: (i, 0)),
        compiler_params=pltpu.CompilerParams(
            dimension_semantics=("parallel",),
            vmem_limit_bytes=32 * 1024 * 1024,  # footprint ~7-14 MiB << v7x 64 MiB
        ),
        cost_estimate=cost,
    )(x_flat, w_p, b_p)

    return out[:, :C]


if __name__ == "__main__":
    num_classes = 4
    N, C_in, H, W = 2, 40, 1, 31

    key = jax.random.PRNGKey(0)
    kx, kw, kb, kx2 = jax.random.split(key, 4)

    x = jax.random.normal(kx, (N, C_in, H, W), dtype=jnp.float32)
    # Deterministic synthetic Conv2d params (PyTorch layout: (C_out, C_in, kH, kW)).
    weight = jax.random.normal(kw, (num_classes, C_in, 1, 31), dtype=jnp.float32) * 0.05
    bias = jax.random.normal(kb, (num_classes,), dtype=jnp.float32) * 0.05

    def ref_head(xv, wv, bv):
        logits = xv.reshape(xv.shape[0], -1) @ wv.reshape(wv.shape[0], -1).T + bv
        return jax.nn.log_softmax(logits, axis=-1)

    # 1) Pallas kernel at the module's tiny batch (force past the small-N
    #    shortcut), f32 for exact parity with the reference.
    out = classifier_forward(x, weight, bias, compute_dtype=jnp.float32, min_pallas_n=0)
    out = jax.block_until_ready(out)
    ref = ref_head(x, weight, bias)
    assert out.shape == (N, num_classes)
    assert jnp.allclose(out, ref, atol=1e-4, rtol=1e-4)

    # 2) Default (bf16 stream, f32 accumulation) on a batch that exercises a
    #    multi-step grid and the partial trailing block (N=37 -> tile_n=16, grid=3).
    N2 = 37
    x2 = jax.random.normal(kx2, (N2, C_in, H, W), dtype=jnp.float32)
    out2 = jax.block_until_ready(classifier_forward(x2, weight, bias, min_pallas_n=0))
    ref2 = ref_head(x2, weight, bias)
    assert out2.shape == (N2, num_classes)
    assert jnp.allclose(out2, ref2, atol=5e-2, rtol=5e-2)

    # 3) Tiny-batch shortcut path (plain XLA, default thresholds).
    out3 = jax.block_until_ready(classifier_forward(x, weight, bias))
    assert out3.shape == (N, num_classes)
    assert jnp.allclose(out3, ref, atol=5e-2, rtol=5e-2)

    print("KERNEL_OK")
</pallas_src>

<mosaic_0001>
module attributes {stable_mosaic.version = 11 : i64} {
  func.func @_classifier_kernel(%arg0: i32, %arg1: memref<2x1240xf32, #tpu.memory_space<vmem>>, %arg2: memref<1240x128xf32, #tpu.memory_space<vmem>>, %arg3: memref<1x128xf32, #tpu.memory_space<vmem>>, %arg4: memref<2x128xf32, #tpu.memory_space<vmem>>) attributes {dimension_semantics = [#tpu.dimension_semantics<parallel>], iteration_bounds = array<i64: 1>, scalar_prefetch = 0 : i64, scratch_operands = 0 : i64, tpu.core_type = #tpu.core_type<tc>, window_params = [{transform_indices = @transform_0, window_bounds = array<i64: 2, 1240>}, {pipeline_mode = #tpu.pipeline_mode<synchronous>, transform_indices = @transform_1, window_bounds = array<i64: 1240, 128>}, {pipeline_mode = #tpu.pipeline_mode<synchronous>, transform_indices = @transform_2, window_bounds = array<i64: 1, 128>}, {transform_indices = @transform_3, window_bounds = array<i64: 2, 128>}]} {
    %c0 = arith.constant 0 : index
    %c0_0 = arith.constant 0 : index
    %0 = vector.load %arg1[%c0, %c0_0] : memref<2x1240xf32, #tpu.memory_space<vmem>>, vector<2x1240xf32>
    %c0_1 = arith.constant 0 : index
    %c0_2 = arith.constant 0 : index
    %1 = vector.load %arg2[%c0_1, %c0_2] : memref<1240x128xf32, #tpu.memory_space<vmem>>, vector<1240x128xf32>
    %cst = arith.constant dense<0.000000e+00> : vector<2x128xf32>
    %2 = tpu.matmul %0, %1, %cst {dimension_numbers = #tpu.dot_dimension_numbers<[1], [0], [0], [1], [0, 0, 1, 1], [], []>} : vector<2x1240xf32>, vector<1240x128xf32>, vector<2x128xf32> -> vector<2x128xf32>
    %c0_3 = arith.constant 0 : index
    %c0_4 = arith.constant 0 : index
    %3 = vector.load %arg3[%c0_3, %c0_4] : memref<1x128xf32, #tpu.memory_space<vmem>>, vector<1x128xf32>
    %4 = vector.broadcast %3 : vector<1x128xf32> to vector<2x128xf32>
    %5 = arith.addf %2, %4 : vector<2x128xf32>
    %cst_5 = arith.constant dense<0xFF800000> : vector<2xf32>
    %6 = vector.multi_reduction <maximumf>, %5, %cst_5 [1] : vector<2x128xf32> to vector<2xf32>
    %7 = vector.shape_cast %6 : vector<2xf32> to vector<2x1xf32>
    %8 = vector.broadcast %7 : vector<2x1xf32> to vector<2x128xf32>
    %9 = arith.subf %5, %8 : vector<2x128xf32>
    %10 = math.exp %9 : vector<2x128xf32>
    %cst_6 = arith.constant dense<0.000000e+00> : vector<2xf32>
    %11 = vector.multi_reduction <add>, %10, %cst_6 [1] : vector<2x128xf32> to vector<2xf32>
    %12 = vector.shape_cast %11 : vector<2xf32> to vector<2x1xf32>
    %13 = math.log %12 : vector<2x1xf32>
    %14 = vector.broadcast %13 : vector<2x1xf32> to vector<2x128xf32>
    %15 = arith.subf %9, %14 : vector<2x128xf32>
    %c0_7 = arith.constant 0 : index
    %c0_8 = arith.constant 0 : index
    %16 = vector.load %arg4[%c0_7, %c0_8] : memref<2x128xf32, #tpu.memory_space<vmem>>, vector<2x128xf32>
    tpu.vector_store %arg4[%c0_7, %c0_8], %15 {strides = array<i32>} : memref<2x128xf32, #tpu.memory_space<vmem>>, vector<2x128xf32>,
    return
  }
  func.func @transform_0(%arg0: i32) -> (i32, i32) {
    %c0_i32 = arith.constant 0 : i32
    %c0_i32_0 = arith.constant 0 : i32
    return %arg0, %c0_i32 : i32, i32
  }
  func.func @transform_1(%arg0: i32) -> (i32, i32) {
    %c0_i32 = arith.constant 0 : i32
    %c0_i32_0 = arith.constant 0 : i32
    %c0_i32_1 = arith.constant 0 : i32
    return %c0_i32, %c0_i32_0 : i32, i32
  }
  func.func @transform_2(%arg0: i32) -> (i32, i32) {
    %c0_i32 = arith.constant 0 : i32
    %c0_i32_0 = arith.constant 0 : i32
    %c0_i32_1 = arith.constant 0 : i32
    return %c0_i32, %c0_i32_0 : i32, i32
  }
  func.func @transform_3(%arg0: i32) -> (i32, i32) {
    %c0_i32 = arith.constant 0 : i32
    %c0_i32_0 = arith.constant 0 : i32
    return %arg0, %c0_i32 : i32, i32
  }
}

</mosaic_0001>

<bundles_post_ra>
// kernel: tpu_custom_call.1
= control target key start
LH: loop header
LB: loop body
LE: loop exit
PB: predicated region body
PF: predicated region fallthrough
CT: control target
= control target key end

     0   :  { %8 = vsyncpa [#allocation3], 0  ;;  %s1157_s0 = inlined_call_operand.hbm [shape: f32[2,1240], index: 0, kind: input, shape index: {}]   ;;  %s1158_s1 = inlined_call_operand.hbm [shape: f32[1240,128], index: 1, kind: input, shape index: {}]   ;;  %s1159_s2 = inlined_call_operand.vmem [shape: f32[1,128], index: 2, kind: input, shape index: {}]   ;;  %s1160_s3 = inlined_call_operand.hbm [shape: f32[2,128], index: 3, kind: output, shape index: {}]  }
   0x1   :  { %9 = vsyncpa [#allocation6], 0 }
   0x2   :  { %10 = vsyncpa [#allocation4], 0  ;;  %s1039_s12 = smov [#allocation2]   ;;  %s1040_s14 = smov [#allocation5]  }
   0x3   :  { %s17_s13 = sshll.u32 %s1039_s12, 4  ;;  %s26_s15 = sshll.u32 %s1040_s14, 4  ;;  %s18_s13 = int_to_ptr.vmem [resolvable:$true] %s17_s13  ;;  %s1067_s15 = int_to_ptr.vmem [resolvable:$true] %s26_s15 }
   0x4   :  { %s967_s18 = scalar_lea.hbm %s1157_s0, 320 }
   0x5   :  { %p968_p0 = scmp.ne.s32.totalorder %s1157_s0, %s967_s18  ;;  %p971_p1 = scmp.lt.u32.totalorder %s967_s18, %s1157_s0 }
   0x7   :  { %p973_p2 = pnand %p971_p1, %p968_p0 }
   0x9   :  { %976 = shalt.err (!%p973_p2)
}
   0xa   :  { %s977_s23 = scalar_lea.vmem %s18_s13, 320  ;;  %p982_p4 = scmp.lt.s32.totalorder %s18_s13, %s18_s13 }
   0xb   :  { %p978_p3 = scmp.ne.s32.totalorder %s18_s13, %s977_s23  ;;  %p983_p5 = scmp.lt.s32.totalorder %s977_s23, %s977_s23 }
   0xd   :  { %p984_p6 = por %p983_p5, %p982_p4 }
   0xf   :  { %p985_p7 = pnand %p984_p6, %p978_p3 }
  0x11   :  { %988 = shalt.err (!%p985_p7)
}
  0x12   :  { %20 = dma.hbm_to_vmem [thread:$0]  %s1157_s0, 320, %s18_s13, [#allocation3]  }
  0x13   :  { %s989_s28 = scalar_lea.hbm %s1158_s1, 19840 }
  0x14   :  { %p990_p8 = scmp.ne.s32.totalorder %s1158_s1, %s989_s28  ;;  %p993_p9 = scmp.lt.u32.totalorder %s989_s28, %s1158_s1 }
  0x16   :  { %p995_p10 = pnand %p993_p9, %p990_p8 }
  0x18   :  { %998 = shalt.err (!%p995_p10)
}
  0x19   :  { %s999_s6 = scalar_lea.vmem %s1067_s15, 19840  ;;  %p1004_p12 = scmp.lt.s32.totalorder %s1067_s15, %s1067_s15 }
  0x1a   :  { %p1000_p11 = scmp.ne.s32.totalorder %s1067_s15, %s999_s6  ;;  %p1005_p13 = scmp.lt.s32.totalorder %s999_s6, %s999_s6 }
  0x1c   :  { %p1006_p0 = por %p1005_p13, %p1004_p12 }
  0x1e   :  { %p1007_p1 = pnand %p1006_p0, %p1000_p11 }
  0x20   :  { %1010 = shalt.err (!%p1007_p1)
}
  0x21   :  { %s1041_s0 = smov 128   ;;  %s1042_s7 = smov 8  }
  0x22   :  { %32 = dma.hbm_to_vmem [thread:$0]  %s1158_s1, 19840, %s1067_s15, [#allocation6], %s1041_s0, %s1041_s0, %s1042_s7  }
  0x23   :  { %1033 = dma.done.wait [#allocation3], 320  }
  0x24   :  { %1034 = vsyncadd [#allocation3], 4294966976 }
  0x25   :  { %1035 = dma.done.wait [#allocation6], 19840  }
  0x26   :  { %1036 = vsyncadd [#allocation6], 4294947456  ;;  %v60_v0 = vld [vmem:[#allocation5 + $0x80] sm:$0xff]  ;;  %v61_v1 = vld [vmem:[#allocation5 + $0x88] sm:$0xff]  ;;  %v1043_v20 = vmov 1983009808   ;;  %v213_v22 = vlaneseq }
  0x27   :  { %v44_v2 = vld [vmem:[#allocation5] sm:$0xff]  ;;  %v786_v3 = vpack.c.bf16 %v61_v1, %v60_v0  ;;  %v45_v4 = vld [vmem:[#allocation5 + $0x8] sm:$0xff]  ;;  %v62_v5 = vld [vmem:[#allocation5 + $0x90] sm:$0xff]  ;;  %v211_v21 = vunpack.c.l.s4 %v1043_v20  ;;  %vm260_vm0 = vcmask 719872   ;;  %vm613_vm1 = vcmask 1041408  }
  0x28   :  { %v63_v6 = vld [vmem:[#allocation5 + $0x98] sm:$0xff]  ;;  %v788_v7 = vpack.c.bf16 %v45_v4, %v44_v2  ;;  %v46_v9 = vld [vmem:[#allocation5 + $0x10] sm:$0xff]  ;;  %v64_v11 = vld [vmem:[#allocation5 + $0xa0] sm:$0xff]  ;;  %v214_v38 = vshrl.u32 %v213_v22, 7 }
  0x29   :  { %v790_v8 = vpack.c.bf16 %v63_v6, %v62_v5  ;;  %v47_v10 = vld [vmem:[#allocation5 + $0x18] sm:$0xff]  ;;  %787 = vmatprep.subr.bf16.mxu1 %v786_v3  ;;  %v65_v12 = vld [vmem:[#allocation5 + $0xa8] sm:$0xff]  ;;  %v48_v14 = vld [vmem:[#allocation5 + $0x20] sm:$0xff]  ;;  %v212_v37 = vunpack.c.0.s8 %v211_v21 }
  0x2a   :  { %789 = vmatpush3.bf16.msra.mxu1 %v788_v7  ;;  %v792_v13 = vpack.c.bf16 %v47_v10, %v46_v9  ;;  %v49_v15 = vld [vmem:[#allocation5 + $0x28] sm:$0xff]  ;;  %v794_v16 = vpack.c.bf16 %v65_v12, %v64_v11  ;;  %v66_v17 = vld [vmem:[#allocation5 + $0xb0] sm:$0xff]  ;;  %v124_v18 = vld [vmem:[#allocation5 + $0x280] sm:$0xff] }
  0x2b   :  { %791 = vmatprep.subr.bf16.mxu1 %v790_v8  ;;  %v125_v19 = vld [vmem:[#allocation5 + $0x288] sm:$0xff]  ;;  %v67_v23 = vld [vmem:[#allocation5 + $0xb8] sm:$0xff]  ;;  %v108_v25 = vld [vmem:[#allocation5 + $0x200] sm:$0xff]  ;;  %v796_v28 = vpack.c.bf16 %v49_v15, %v48_v14  ;;  %v1098_v55 = vsub.s32 %v212_v37, %v214_v38 }
  0x2c   :  { %v850_v24 = vpack.c.bf16 %v125_v19, %v124_v18  ;;  %v109_v26 = vld [vmem:[#allocation5 + $0x208] sm:$0xff]  ;;  %v126_v29 = vld [vmem:[#allocation5 + $0x290] sm:$0xff]  ;;  %v127_v30 = vld [vmem:[#allocation5 + $0x298] sm:$0xff]  ;;  %v798_v32 = vpack.c.bf16 %v67_v23, %v66_v17 }
  0x2d   :  { %v852_v27 = vpack.c.bf16 %v109_v26, %v108_v25  ;;  %v110_v31 = vld [vmem:[#allocation5 + $0x210] sm:$0xff]  ;;  %v51_v34 = vld [vmem:[#allocation5 + $0x38] sm:$0xff]  ;;  %v854_v35 = vpack.c.bf16 %v127_v30, %v126_v29  ;;  %v68_v39 = vld [vmem:[#allocation5 + $0xc0] sm:$0xff] }
  0x2e   :  { %793 = vmatpush3.bf16.msra.mxu1 %v792_v13  ;;  %851 = vmatprep.subr.bf16.mxu0 %v850_v24  ;;  %v50_v33 = vld [vmem:[#allocation5 + $0x30] sm:$0xff]  ;;  %v111_v36 = vld [vmem:[#allocation5 + $0x218] sm:$0xff]  ;;  %v69_v40 = vld [vmem:[#allocation5 + $0xc8] sm:$0xff] }
  0x2f   :  { %795 = vmatprep.subr.bf16.mxu1 %v794_v16  ;;  %853 = vmatpush3.bf16.msra.mxu0 %v852_v27  ;;  %v856_v41 = vpack.c.bf16 %v111_v36, %v110_v31  ;;  %v128_v42 = vld [vmem:[#allocation5 + $0x2a0] sm:$0xff]  ;;  %v129_v43 = vld [vmem:[#allocation5 + $0x2a8] sm:$0xff]  ;;  %v800_v46 = vpack.c.bf16 %v51_v34, %v50_v33  ;;  %v802_v50 = vpack.c.bf16 %v69_v40, %v68_v39  ;;  %v70_v51 = vld [vmem:[#allocation5 + $0xd0] sm:$0xff] }
  0x30   :  { %855 = vmatprep.subr.bf16.mxu0 %v854_v35  ;;  %v112_v44 = vld [vmem:[#allocation5 + $0x220] sm:$0xff]  ;;  %v113_v45 = vld [vmem:[#allocation5 + $0x228] sm:$0xff]  ;;  %v858_v49 = vpack.c.bf16 %v129_v43, %v128_v42  ;;  %v130_v53 = vld [vmem:[#allocation5 + $0x2b0] sm:$0xff] }
  0x31   :  { %v52_v47 = vld [vmem:[#allocation5 + $0x40] sm:$0xff]  ;;  %v53_v48 = vld [vmem:[#allocation5 + $0x48] sm:$0xff]  ;;  %v860_v52 = vpack.c.bf16 %v113_v45, %v112_v44  ;;  %v131_v54 = vld [vmem:[#allocation5 + $0x2b8] sm:$0xff] }
  0x32   :  { %797 = vmatpush3.bf16.msra.mxu1 %v796_v28  ;;  %v71_v56 = vld [vmem:[#allocation5 + $0xd8] sm:$0xff]  ;;  %v862_v57 = vpack.c.bf16 %v131_v54, %v130_v53  ;;  %v114_v58 = vld [vmem:[#allocation5 + $0x230] sm:$0xff]  ;;  %v804_v60 = vpack.c.bf16 %v53_v48, %v52_v47  ;;  %v132_v61 = vld [vmem:[#allocation5 + $0x2c0] sm:$0xff] }
  0x33   :  { %799 = vmatprep.subr.bf16.mxu1 %v798_v32  ;;  %857 = vmatpush3.bf16.msra.mxu0 %v856_v41  ;;  %v115_v59 = vld [vmem:[#allocation5 + $0x238] sm:$0xff]  ;;  %v133_v62 = vld [vmem:[#allocation5 + $0x2c8] sm:$0xff]  ;;  %v806_v0 = vpack.c.bf16 %v71_v56, %v70_v51  ;;  %v54_v1 = vld [vmem:[#allocation5 + $0x50] sm:$0xff] }
  0x34   :  { %859 = vmatprep.subr.bf16.mxu0 %v858_v49  ;;  %v41_v63 = vld [vmem:[#allocation2] sm:$0xff]  ;;  %v55_v2 = vld [vmem:[#allocation5 + $0x58] sm:$0xff]  ;;  %v72_v3 = vld [vmem:[#allocation5 + $0xe0] sm:$0xff]  ;;  %v864_v4 = vpack.c.bf16 %v115_v59, %v114_v58  ;;  %v866_v7 = vpack.c.bf16 %v133_v62, %v132_v61 }
  0x35   :  { %v1101_v5 = vrot.slane %v41_v63, %v1098_v55  ;;  %v73_v6 = vld [vmem:[#allocation5 + $0xe8] sm:$0xff]  ;;  %v116_v8 = vld [vmem:[#allocation5 + $0x240] sm:$0xff]  ;;  %v134_v11 = vld [vmem:[#allocation5 + $0x2d0] sm:$0xff]  ;;  %v808_v13 = vpack.c.bf16 %v55_v2, %v54_v1  ;;  %v209_v26 = vcombine.high %v41_v63, %v41_v63 }
  0x36   :  { %801 = vmatpush3.bf16.msra.mxu1 %v800_v46  ;;  %v117_v9 = vld [vmem:[#allocation5 + $0x248] sm:$0xff]  ;;  %v135_v12 = vld [vmem:[#allocation5 + $0x2d8] sm:$0xff]  ;;  %v810_v14 = vpack.c.bf16 %v73_v6, %v72_v3  ;;  %v56_v15 = vld [vmem:[#allocation5 + $0x60] sm:$0xff] }
  0x37   :  { %803 = vmatprep.subr.bf16.mxu1 %v802_v50  ;;  %861 = vmatpush3.bf16.msra.mxu0 %v860_v52  ;;  %v224_v10 = vcombine.high %v1101_v5, %v1101_v5  ;;  %v57_v16 = vld [vmem:[#allocation5 + $0x68] sm:$0xff]  ;;  %v74_v17 = vld [vmem:[#allocation5 + $0xf0] sm:$0xff]  ;;  %v868_v18 = vpack.c.bf16 %v117_v9, %v116_v8  ;;  %v75_v19 = vld [vmem:[#allocation5 + $0xf8] sm:$0xff]  ;;  %v870_v20 = vpack.c.bf16 %v135_v12, %v134_v11 }
  0x38   :  { %863 = vmatprep.subr.bf16.mxu0 %v862_v57  ;;  %v118_v21 = vld [vmem:[#allocation5 + $0x250] sm:$0xff]  ;;  %v119_v22 = vld [vmem:[#allocation5 + $0x258] sm:$0xff]  ;;  %v136_v23 = vld [vmem:[#allocation5 + $0x2e0] sm:$0xff]  ;;  %v812_v25 = vpack.c.bf16 %v57_v16, %v56_v15  ;;  %v814_v27 = vpack.c.bf16 %v75_v19, %v74_v17  ;;  %v1110_v41 = vrot.slane %v209_v26, %v1098_v55 }
  0x39   :  { %327 = vmatprep.mubr.f32.mxu1 %v224_v10  ;;  %v137_v24 = vld [vmem:[#allocation5 + $0x2e8] sm:$0xff]  ;;  %v58_v28 = vld [vmem:[#allocation5 + $0x70] sm:$0xff]  ;;  %v59_v29 = vld [vmem:[#allocation5 + $0x78] sm:$0xff]  ;;  %v872_v31 = vpack.c.bf16 %v119_v22, %v118_v21 }
  0x3a   :  { %805 = vmatpush3.bf16.msra.mxu1 %v804_v60  ;;  %v92_v30 = vld [vmem:[#allocation5 + $0x180] sm:$0xff]  ;;  %v93_v32 = vld [vmem:[#allocation5 + $0x188] sm:$0xff]  ;;  %v874_v33 = vpack.c.bf16 %v137_v24, %v136_v23  ;;  %v138_v36 = vld [vmem:[#allocation5 + $0x2f0] sm:$0xff]  ;;  %v816_v39 = vpack.c.bf16 %v59_v29, %v58_v28  ;;  %v225_v53 = vcombine.high %v1110_v41, %v1110_v41 }
  0x3b   :  { %807 = vmatprep.subr.bf16.mxu1 %v806_v0  ;;  %865 = vmatpush3.bf16.msra.mxu0 %v864_v4  ;;  %v120_v34 = vld [vmem:[#allocation5 + $0x260] sm:$0xff]  ;;  %v121_v35 = vld [vmem:[#allocation5 + $0x268] sm:$0xff]  ;;  %v139_v37 = vld [vmem:[#allocation5 + $0x2f8] sm:$0xff]  ;;  %v818_v42 = vpack.c.bf16 %v93_v32, %v92_v30 }
  0x3c   :  { %867 = vmatprep.subr.bf16.mxu0 %v866_v7  ;;  %v1105_v38 = vld [vmem:[#allocation2 + $0x8] sm:$0xff]  ;;  %v76_v43 = vld [vmem:[#allocation5 + $0x100] sm:$0xff]  ;;  %v77_v44 = vld [vmem:[#allocation5 + $0x108] sm:$0xff]  ;;  %v876_v46 = vpack.c.bf16 %v121_v35, %v120_v34  ;;  %v878_v48 = vpack.c.bf16 %v139_v37, %v138_v36  ;;  %v1044_v7 = vmov 0.0|0.0  }
  0x3d   :  { %v233_v40 = vrot.slane %v1105_v38, %v1098_v55  ;;  %v94_v45 = vld [vmem:[#allocation5 + $0x190] sm:$0xff]  ;;  %v95_v47 = vld [vmem:[#allocation5 + $0x198] sm:$0xff]  ;;  %v820_v52 = vpack.c.bf16 %v77_v44, %v76_v43  ;;  %v96_v58 = vld [vmem:[#allocation5 + $0x1a0] sm:$0xff] }
  0x3e   :  { %809 = vmatpush3.bf16.msra.mxu1 %v808_v13  ;;  %v122_v49 = vld [vmem:[#allocation5 + $0x270] sm:$0xff]  ;;  %v123_v50 = vld [vmem:[#allocation5 + $0x278] sm:$0xff]  ;;  %v822_v54 = vpack.c.bf16 %v95_v47, %v94_v45  ;;  %v97_v60 = vld [vmem:[#allocation5 + $0x1a8] sm:$0xff] }
  0x3f   :  { %811 = vmatprep.subr.bf16.mxu1 %v810_v14  ;;  %869 = vmatpush3.bf16.msra.mxu0 %v868_v18  ;;  %v241_v51 = vcombine.high %v233_v40, %v233_v40  ;;  %v78_v56 = vld [vmem:[#allocation5 + $0x110] sm:$0xff]  ;;  %v79_v57 = vld [vmem:[#allocation5 + $0x118] sm:$0xff]  ;;  %v880_v59 = vpack.c.bf16 %v123_v50, %v122_v49  ;;  %v172_v61 = vld [vmem:[#allocation5 + $0x400] sm:$0xff]  ;;  %v826_v0 = vpack.c.bf16 %v97_v60, %v96_v58 }
  0x40   :  { %871 = vmatprep.subr.bf16.mxu0 %v870_v20  ;;  %v173_v62 = vld [vmem:[#allocation5 + $0x408] sm:$0xff]  ;;  %v824_v63 = vpack.c.bf16 %v79_v57, %v78_v56  ;;  %v80_v1 = vld [vmem:[#allocation5 + $0x120] sm:$0xff]  ;;  %v98_v3 = vld [vmem:[#allocation5 + $0x1b0] sm:$0xff]  ;;  %v226_v49 = vcombine.high %v1105_v38, %v1105_v38 }
  0x41   :  { %467 = vmatprep.mubr.f32.mxu0 %v241_v51  ;;  %v81_v2 = vld [vmem:[#allocation5 + $0x128] sm:$0xff]  ;;  %v915_v4 = vpack.c.bf16 %v173_v62, %v172_v61  ;;  %v99_v6 = vld [vmem:[#allocation5 + $0x1b8] sm:$0xff]  ;;  %v174_v8 = vld [vmem:[#allocation5 + $0x410] sm:$0xff] }
  0x42   :  { %813 = vmatpush3.bf16.msra.mxu1 %v812_v25  ;;  %v175_v9 = vld [vmem:[#allocation5 + $0x418] sm:$0xff]  ;;  %v828_v10 = vpack.c.bf16 %v81_v2, %v80_v1  ;;  %v82_v11 = vld [vmem:[#allocation5 + $0x130] sm:$0xff]  ;;  %v100_v13 = vld [vmem:[#allocation5 + $0x1c0] sm:$0xff]  ;;  %v1128_v61 = vrot.slane %v226_v49, %v1098_v55 }
  0x43   :  { %815 = vmatprep.subr.bf16.mxu1 %v814_v27  ;;  %873 = vmatpush3.bf16.msra.mxu0 %v872_v31  ;;  %v83_v12 = vld [vmem:[#allocation5 + $0x138] sm:$0xff]  ;;  %v918_v14 = vpack.c.bf16 %v175_v9, %v174_v8  ;;  %v101_v15 = vld [vmem:[#allocation5 + $0x1c8] sm:$0xff]  ;;  %v176_v16 = vld [vmem:[#allocation5 + $0x420] sm:$0xff] }
  0x44   :  { %875 = vmatprep.subr.bf16.mxu0 %v874_v33  ;;  %v177_v17 = vld [vmem:[#allocation5 + $0x428] sm:$0xff]  ;;  %v832_v18 = vpack.c.bf16 %v83_v12, %v82_v11  ;;  %v834_v19 = vpack.c.bf16 %v101_v15, %v100_v13  ;;  %v84_v20 = vld [vmem:[#allocation5 + $0x140] sm:$0xff]  ;;  %v102_v22 = vld [vmem:[#allocation5 + $0x1d0] sm:$0xff]  ;;  %v242_v8 = vcombine.high %v1128_v61, %v1128_v61 }
  0x45   :  { %v85_v21 = vld [vmem:[#allocation5 + $0x148] sm:$0xff]  ;;  %v921_v23 = vpack.c.bf16 %v177_v17, %v176_v16  ;;  %v103_v24 = vld [vmem:[#allocation5 + $0x1d8] sm:$0xff]  ;;  %v178_v25 = vld [vmem:[#allocation5 + $0x430] sm:$0xff] }
  0x46   :  { %817 = vmatpush3.bf16.msra.mxu1 %v816_v39  ;;  %v179_v26 = vld [vmem:[#allocation5 + $0x438] sm:$0xff]  ;;  %v836_v27 = vpack.c.bf16 %v85_v21, %v84_v20  ;;  %v838_v28 = vpack.c.bf16 %v103_v24, %v102_v22  ;;  %v86_v29 = vld [vmem:[#allocation5 + $0x150] sm:$0xff]  ;;  %v104_v31 = vld [vmem:[#allocation5 + $0x1e0] sm:$0xff] }
  0x47   :  { %819 = vmatprep.subr.bf16.mxu1 %v818_v42  ;;  %877 = vmatpush3.bf16.msra.mxu0 %v876_v46  ;;  %v87_v30 = vld [vmem:[#allocation5 + $0x158] sm:$0xff]  ;;  %v924_v32 = vpack.c.bf16 %v179_v26, %v178_v25  ;;  %v105_v33 = vld [vmem:[#allocation5 + $0x1e8] sm:$0xff]  ;;  %v180_v34 = vld [vmem:[#allocation5 + $0x440] sm:$0xff] }
  0x48   :  { %879 = vmatprep.subr.bf16.mxu0 %v878_v48  ;;  %v181_v35 = vld [vmem:[#allocation5 + $0x448] sm:$0xff]  ;;  %v840_v36 = vpack.c.bf16 %v87_v30, %v86_v29  ;;  %v1119_v37 = vld.sshfl [vmem:[#allocation2 + $0x10] sm:$0x33 pattern:$0x76325410]  ;;  %v842_v39 = vpack.c.bf16 %v105_v33, %v104_v31  ;;  %v106_v43 = vld [vmem:[#allocation5 + $0x1f0] sm:$0xff] }
  0x49   :  { %328 = vmatmul.mubr.f32.vlgmr.msra.gmra.mrb[0].mxu1 %v1101_v5  ;;  %v830_v5 = vpack.c.bf16 %v99_v6, %v98_v3  ;;  %v89_v42 = vld [vmem:[#allocation5 + $0x168] sm:$0xff]  ;;  %v927_v44 = vpack.c.bf16 %v181_v35, %v180_v34  ;;  %v250_v45 = vcombine.high %v1119_v37, %v1119_v37  ;;  %v107_v46 = vld [vmem:[#allocation5 + $0x1f8] sm:$0xff]  ;;  %v182_v47 = vld [vmem:[#allocation5 + $0x450] sm:$0xff] }
  0x4a   :  { %821 = vmatpush3.bf16.msra.mxu1 %v820_v52  ;;  %397 = vmatprep.mubr.f32.mxu1 %v225_v53  ;;  %v183_v48 = vld [vmem:[#allocation5 + $0x458] sm:$0xff]  ;;  %v846_v51 = vpack.c.bf16 %v107_v46, %v106_v43  ;;  %v90_v52 = vld [vmem:[#allocation5 + $0x170] sm:$0xff]  ;;  %v157_v57 = vld [vmem:[#allocation5 + $0x388] sm:$0xff] }
  0x4b   :  { %823 = vmatprep.subr.bf16.mxu1 %v822_v54  ;;  %881 = vmatpush3.bf16.msra.mxu0 %v880_v59  ;;  %v91_v53 = vld [vmem:[#allocation5 + $0x178] sm:$0xff]  ;;  %v156_v54 = vld [vmem:[#allocation5 + $0x380] sm:$0xff]  ;;  %v930_v56 = vpack.c.bf16 %v183_v48, %v182_v47  ;;  %v185_v59 = vld [vmem:[#allocation5 + $0x468] sm:$0xff] }
  0x4c   :  { %914 = vmatprep.subr.bf16.mxu0 %v1044_v7  ;;  %v184_v58 = vld [vmem:[#allocation5 + $0x460] sm:$0xff]  ;;  %v848_v60 = vpack.c.bf16 %v91_v53, %v90_v52  ;;  %v882_v38 = vpack.c.bf16 %v157_v57, %v156_v54  ;;  %v159_v2 = vld [vmem:[#allocation5 + $0x398] sm:$0xff]  ;;  %v186_v3 = vld [vmem:[#allocation5 + $0x470] sm:$0xff] }
  0x4d   :  { %v140_v62 = vld [vmem:[#allocation5 + $0x300] sm:$0xff]  ;;  %v933_v1 = vpack.c.bf16 %v185_v59, %v184_v58  ;;  %v142_v9 = vld [vmem:[#allocation5 + $0x310] sm:$0xff]  ;;  %v161_v12 = vld [vmem:[#allocation5 + $0x3a8] sm:$0xff] }
  0x4e   :  { %825 = vmatpush3.bf16.msra.mxu1 %v824_v63  ;;  %468 = vmatmul.mubr.f32.vlgmr.msra.gmra.mrb[0].mxu0 %v233_v40  ;;  %v88_v40 = vld [vmem:[#allocation5 + $0x160] sm:$0xff]  ;;  %v141_v63 = vld [vmem:[#allocation5 + $0x308] sm:$0xff]  ;;  %v163_v21 = vld [vmem:[#allocation5 + $0x3b8] sm:$0xff] }
  0x4f   :  { %827 = vmatprep.subr.bf16.mxu1 %v826_v0  ;;  %916 = vmatpush1.bf16.msra.mxu0 %v915_v4  ;;  %v844_v50 = vpack.c.bf16 %v89_v42, %v88_v40  ;;  %v158_v0 = vld [vmem:[#allocation5 + $0x390] sm:$0xff]  ;;  %v187_v4 = vld [vmem:[#allocation5 + $0x478] sm:$0xff]  ;;  %v884_v6 = vpack.c.bf16 %v141_v63, %v140_v62  ;;  %v188_v13 = vld [vmem:[#allocation5 + $0x480] sm:$0xff] }
  0x50   :  { %917 = vmatprep.subr.bf16.mxu0 %v1044_v7  ;;  %645 = vmatprep.mubr.msk.f32.mxu0 %vm260_vm0, %v250_v45  ;;  %v886_v55 = vpack.c.bf16 %v159_v2, %v158_v0  ;;  %v936_v11 = vpack.c.bf16 %v187_v4, %v186_v3  ;;  %v144_v17 = vld [vmem:[#allocation5 + $0x320] sm:$0xff]  ;;  %v190_v22 = vld [vmem:[#allocation5 + $0x490] sm:$0xff]  ;;  %v147_v26 = vld [vmem:[#allocation5 + $0x338] sm:$0xff] }
  0x51   :  { %v165_v29 = vld [vmem:[#allocation5 + $0x3c8] sm:$0xff]  ;;  %v192_v30 = vld [vmem:[#allocation5 + $0x4a0] sm:$0xff]  ;;  %v167_v40 = vld [vmem:[#allocation5 + $0x3d8] sm:$0xff] }
  0x52   :  { %829 = vmatpush3.bf16.msra.mxu1 %v828_v10  ;;  %v143_v10 = vld [vmem:[#allocation5 + $0x318] sm:$0xff]  ;;  %v193_v31 = vld [vmem:[#allocation5 + $0x4a8] sm:$0xff]  ;;  %v148_v34 = vld [vmem:[#allocation5 + $0x340] sm:$0xff] }
  0x53   :  { %831 = vmatprep.subr.bf16.mxu1 %v830_v5  ;;  %919 = vmatpush1.bf16.msra.mxu0 %v918_v14  ;;  %v160_v5 = vld [vmem:[#allocation5 + $0x3a0] sm:$0xff]  ;;  %v189_v14 = vld [vmem:[#allocation5 + $0x488] sm:$0xff]  ;;  %v888_v15 = vpack.c.bf16 %v143_v10, %v142_v9  ;;  %v194_v42 = vld [vmem:[#allocation5 + $0x4b0] sm:$0xff] }
  0x54   :  { %920 = vmatprep.subr.bf16.mxu0 %v1044_v7  ;;  %v890_v16 = vpack.c.bf16 %v161_v12, %v160_v5  ;;  %v939_v20 = vpack.c.bf16 %v189_v14, %v188_v13  ;;  %v149_v35 = vld [vmem:[#allocation5 + $0x348] sm:$0xff]  ;;  %v195_v43 = vld [vmem:[#allocation5 + $0x4b8] sm:$0xff]  ;;  %v150_v46 = vld [vmem:[#allocation5 + $0x350] sm:$0xff] }
  0x55   :  { %v151_v47 = vld [vmem:[#allocation5 + $0x358] sm:$0xff]  ;;  %v168_v48 = vld [vmem:[#allocation5 + $0x3e0] sm:$0xff]  ;;  %v948_v49 = vpack.c.bf16 %v195_v43, %v194_v42  ;;  %v197_v52 = vld [vmem:[#allocation5 + $0x4c8] sm:$0xff] }
  0x56   :  { %833 = vmatpush3.bf16.msra.mxu1 %v832_v18  ;;  %v145_v18 = vld [vmem:[#allocation5 + $0x328] sm:$0xff]  ;;  %v904_v53 = vpack.c.bf16 %v151_v47, %v150_v46  ;;  %v170_v59 = vld [vmem:[#allocation5 + $0x3f0] sm:$0xff]  ;;  %v155_v0 = vld [vmem:[#allocation5 + $0x378] sm:$0xff] }
  0x57   :  { %835 = vmatprep.subr.bf16.mxu1 %v834_v19  ;;  %922 = vmatpush1.bf16.msra.mxu0 %v921_v23  ;;  %v162_v19 = vld [vmem:[#allocation5 + $0x3b0] sm:$0xff]  ;;  %v191_v23 = vld [vmem:[#allocation5 + $0x498] sm:$0xff]  ;;  %v892_v24 = vpack.c.bf16 %v145_v18, %v144_v17  ;;  %v153_v57 = vld [vmem:[#allocation5 + $0x368] sm:$0xff] }
  0x58   :  { %923 = vmatprep.subr.bf16.mxu0 %v1044_v7  ;;  %v894_v25 = vpack.c.bf16 %v163_v21, %v162_v19  ;;  %v154_v63 = vld [vmem:[#allocation5 + $0x370] sm:$0xff]  ;;  %v643_v10 = vld [vmem:[%s1159_s2] ss:$0 sm:$0xff]  ;;  %s1046_s2 = smov [#allocation7]  }
  0x59   :  { %v198_v2 = vld [vmem:[#allocation5 + $0x4d0] sm:$0xff]  ;;  %v912_v3 = vpack.c.bf16 %v155_v0, %v154_v63  ;;  %s633_s11 = sshll.u32 %s1046_s2, 4  ;;  %s634_s11 = int_to_ptr.vmem [resolvable:$true] %s633_s11 }
  0x5a   :  { %837 = vmatpush3.bf16.msra.mxu1 %v836_v27  ;;  %v164_v27 = vld [vmem:[#allocation5 + $0x3c0] sm:$0xff]  ;;  %s1011_s12 = scalar_lea.vmem %s634_s11, 32  ;;  %p1016_p3 = scmp.lt.s32.totalorder %s634_s11, %s634_s11 }
  0x5b   :  { %839 = vmatprep.subr.bf16.mxu1 %v838_v28  ;;  %925 = vmatpush1.bf16.msra.mxu0 %v924_v32  ;;  %v942_v28 = vpack.c.bf16 %v191_v23, %v190_v22  ;;  %v898_v33 = vpack.c.bf16 %v165_v29, %v164_v27  ;;  %p1012_p2 = scmp.ne.s32.totalorder %s634_s11, %s1011_s12  ;;  %p1017_p4 = scmp.lt.s32.totalorder %s1011_s12, %s1011_s12 }
  0x5c   :  { %926 = vmatprep.subr.bf16.mxu0 %v1044_v7 }
  0x5d   :  { %p1018_p5 = por %p1017_p4, %p1016_p3 }
  0x5e   :  { %841 = vmatpush3.bf16.msra.mxu1 %v840_v36  ;;  %v166_v36 = vld [vmem:[#allocation5 + $0x3d0] sm:$0xff] }
  0x5f   :  { %843 = vmatprep.subr.bf16.mxu1 %v842_v39  ;;  %928 = vmatpush1.bf16.msra.mxu0 %v927_v44  ;;  %v945_v39 = vpack.c.bf16 %v193_v31, %v192_v30  ;;  %v900_v44 = vpack.c.bf16 %v149_v35, %v148_v34  ;;  %v902_v45 = vpack.c.bf16 %v167_v40, %v166_v36  ;;  %p1019_p6 = pnand %p1018_p5, %p1012_p2 }
  0x60   :  { %929 = vmatprep.subr.bf16.mxu0 %v1044_v7 }
  0x62   :  { %845 = vmatpush3.bf16.msra.mxu1 %v844_v50  ;;  %v169_v50 = vld [vmem:[#allocation5 + $0x3e8] sm:$0xff] }
  0x63   :  { %847 = vmatprep.subr.bf16.mxu1 %v846_v51  ;;  %931 = vmatpush1.bf16.msra.mxu0 %v930_v56  ;;  %v196_v51 = vld [vmem:[#allocation5 + $0x4c0] sm:$0xff]  ;;  %v906_v54 = vpack.c.bf16 %v169_v50, %v168_v48 }
  0x64   :  { %932 = vmatprep.subr.bf16.mxu0 %v1044_v7  ;;  %v152_v56 = vld [vmem:[#allocation5 + $0x360] sm:$0xff]  ;;  %v951_v58 = vpack.c.bf16 %v197_v52, %v196_v51 }
  0x66   :  { %849 = vmatpush3.bf16.msra.mxu1 %v848_v60  ;;  %v171_v60 = vld [vmem:[#allocation5 + $0x3f8] sm:$0xff] }
  0x67   :  { %883 = vmatprep.subr.bf16.mxu1 %v882_v38  ;;  %934 = vmatpush1.bf16.msra.mxu0 %v933_v1  ;;  %v908_v38 = vpack.c.bf16 %v153_v57, %v152_v56  ;;  %v910_v62 = vpack.c.bf16 %v171_v60, %v170_v59  ;;  %v1045_v1 = vmov 0.0  }
  0x68   :  { %935 = vmatprep.subr.bf16.mxu0 %v1044_v7 }
  0x69   :  { %398 = vmatmul.mubr.f32.vlgmr.msra.gmra.mrb[2].mxu1 %v1110_v41  ;;  %v146_v41 = vld [vmem:[#allocation5 + $0x330] sm:$0xff] }
  0x6a   :  { %885 = vmatpush3.bf16.msra.mxu1 %v884_v6  ;;  %537 = vmatprep.mubr.f32.mxu1 %v242_v8  ;;  %v896_v32 = vpack.c.bf16 %v147_v26, %v146_v41 }
  0x6b   :  { %887 = vmatprep.subr.bf16.mxu1 %v886_v55  ;;  %937 = vmatpush1.bf16.msra.mxu0 %v936_v11 }
  0x6c   :  { %938 = vmatprep.subr.bf16.mxu0 %v1044_v7 }
  0x6e   :  { %889 = vmatpush3.bf16.msra.mxu1 %v888_v15 }
  0x6f   :  { %891 = vmatprep.subr.bf16.mxu1 %v890_v16  ;;  %940 = vmatpush1.bf16.msra.mxu0 %v939_v20 }
  0x70   :  { %941 = vmatprep.subr.bf16.mxu0 %v1044_v7 }
  0x72   :  { %893 = vmatpush3.bf16.msra.mxu1 %v892_v24 }
  0x73   :  { %895 = vmatprep.subr.bf16.mxu1 %v894_v25  ;;  %943 = vmatpush1.bf16.msra.mxu0 %v942_v28 }
  0x74   :  { %944 = vmatprep.subr.bf16.mxu0 %v1044_v7 }
  0x76   :  { %897 = vmatpush3.bf16.msra.mxu1 %v896_v32 }
  0x77   :  { %899 = vmatprep.subr.bf16.mxu1 %v898_v33  ;;  %946 = vmatpush1.bf16.msra.mxu0 %v945_v39 }
  0x78   :  { %947 = vmatprep.subr.bf16.mxu0 %v1044_v7 }
  0x7a   :  { %901 = vmatpush3.bf16.msra.mxu1 %v900_v44 }
  0x7b   :  { %903 = vmatprep.subr.bf16.mxu1 %v902_v45  ;;  %949 = vmatpush1.bf16.msra.mxu0 %v948_v49 }
  0x7c   :  { %950 = vmatprep.subr.bf16.mxu0 %v1044_v7 }
  0x7e   :  { %905 = vmatpush3.bf16.msra.mxu1 %v904_v53 }
  0x7f   :  { %907 = vmatprep.subr.bf16.mxu1 %v906_v54  ;;  %952 = vmatpush1.bf16.msra.mxu0 %v951_v58 }
  0x80   :  { %595 = vmatprep.subr.mxu0 %v1045_v1 }
  0x82   :  { %909 = vmatpush3.bf16.msra.mxu1 %v908_v38 }
  0x83   :  { %911 = vmatprep.subr.bf16.mxu1 %v910_v62  ;;  %596 = vmatpush1.msra.mxu0 %v198_v2 }
  0x84   :  { %608 = vmatmul.mubr.f32.vlgmr.msra.gmra.mrb[2].mxu0 %v1119_v37 }
  0x86   :  { %913 = vmatpush3.bf16.msra.mxu1 %v912_v3 }
  0x89   :  { %538 = vmatmul.mubr.f32.vlgmr.msra.gmra.mrb[4].mxu1 %v1128_v61 }
 0x11c   :  { %v678_v7 = vpop.f32.mrb[0].mxu1 }
 0x11d   :  { %v679_v4 = vpop.f32.mrb[1].mxu1 }
 0x11e   :  { %v680_v6 = vadd.f32 %v679_v4, %v678_v7 }
 0x120   :  { %v330_v12 = vadd.f32 %v680_v6, %v643_v10 }
 0x121   :  { %v748_v8 = vpop.f32.mrb[0].mxu0 }
 0x122   :  { %v749_v55 = vpop.f32.mrb[1].mxu0 }
 0x123   :  { %v750_v9 = vadd.f32 %v749_v55, %v748_v8 }
 0x13c   :  { %v713_v5 = vpop.f32.mrb[2].mxu1 }
 0x13d   :  { %v714_v11 = vpop.f32.mrb[3].mxu1 }
 0x13e   :  { %v715_v13 = vadd.f32 %v714_v11, %v713_v5 }
 0x140   :  { %v400_v14 = vadd.f32 %v715_v13, %v330_v12 }
 0x142   :  { %v470_v15 = vadd.f32 %v750_v9, %v400_v14 }
 0x157   :  { %v609_v37 = vpop.f32.mrb[2].mxu0 }
 0x158   :  { %v611_v16 = vpop.f32.mrb[3].mxu0 }
 0x15c   :  { %v783_v17 = vpop.f32.mrb[4].mxu1 }
 0x15d   :  { %v784_v61 = vpop.f32.mrb[5].mxu1 }
 0x15e   :  { %v785_v18 = vadd.f32 %v784_v61, %v783_v17 }
 0x160   :  { %v540_v19 = vadd.f32 %v785_v18, %v470_v15 }
 0x162   :  { %v610_v20 = vadd.f32 %v609_v37, %v540_v19 }
 0x164   :  { %v614_v21 = vsel %vm613_vm1, %v610_v20, -inf }
 0x165   :  { %615 = vmax.xlane.f32.xlu0 %v614_v21 }
 0x1f2   :  { %v616_v22 = vpop.xlane.xlu0 %615 }
 0x1f3   :  { %v617_v23 = vsub.f32 %v610_v20, %v616_v22 }
 0x1f5   :  { %v618_v24 = vmul.f32 1.442695, %v617_v23 }
 0x1f7   :  { %963 = vpow2.f32 %v618_v24 }
 0x201   :  { %v964_v25 = vpop.eup %963 }
 0x202   :  { %v620_v41 = vsel %vm613_vm1, %v964_v25, 0.0 }
 0x203   :  { %621 = vadd.xlane.f32.xlu0 %v620_v41 }
 0x290   :  { %v622_v26 = vpop.xlane.xlu0 %621 }
 0x291   :  { %965 = vlog2.f32 %v622_v26 }
 0x29b   :  { %v966_v27 = vpop.eup %965 }
 0x29c   :  { %v624_v28 = vmul.f32 0.6931472, %v966_v27 }
 0x29e   :  { %v625_v29 = vsub.f32 %v617_v23, %v624_v28 }
 0x2a0   :  { %626 = vst [vmem:[#allocation7] sm:$0x3] %v625_v29 }
 0x2a1   :  { %1022 = shalt.err (!%p1019_p6)
}
 0x2a2   :  { %s1023_s15 = scalar_lea.hbm %s1160_s3, 32 }
 0x2a3   :  { %p1024_p7 = scmp.ne.s32.totalorder %s1160_s3, %s1023_s15  ;;  %p1027_p8 = scmp.lt.u32.totalorder %s1023_s15, %s1160_s3 }
 0x2a5   :  { %p1029_p9 = pnand %p1027_p8, %p1024_p7 }
 0x2a7   :  { %1032 = shalt.err (!%p1029_p9)
}
 0x2a8   :  { %636 = dma.vmem_to_hbm [thread:$0]  %s634_s11, 32, %s1160_s3, [#allocation4]  }
 0x2a9   :  { %1037 = dma.done.wait [#allocation4], 32  }
 0x2aa   :  { %1038 = vsyncadd [#allocation4], 4294967264 }
 0x2ab   :  { %640 = vsyncpa [#allocation3], 1 }
 0x2ac   :  { %641 = vsyncpa [#allocation6], 1 }
 0x2ad   :  { %642 = vsyncpa [#allocation4], 1 }

</bundles_post_ra>
